<compile_context>
chip_gen: v6e
topology: v6e:2x2x1
jax: 0.10.0
libtpu: 0.0.40
codegen_flags: <defaults>
</compile_context>

<pallas_src>
import jax
import jax.numpy as jnp
from jax.experimental import pallas as pl
from jax.experimental.pallas import tpu as pltpu

LN_EPS = 1e-5  # torch.nn.LayerNorm default


def _layer_norm_rows(x32, d_real):
    """Row-wise LayerNorm in f32 (affine folded into the linear weight)."""
    inv_d = jnp.float32(1.0 / d_real)
    mean = jnp.sum(x32, axis=-1, keepdims=True) * inv_d
    xc = x32 - mean
    # Two-pass variance: avoids the E[x^2]-E[x]^2 cancellation issue; the extra
    # reduction runs on the XLU, off the VALU/MXU critical path.
    var = jnp.sum(xc * xc, axis=-1, keepdims=True) * inv_d
    return xc * jax.lax.rsqrt(var + LN_EPS)


def _prenorm_kernel(x_ref, w_ref, b_ref, o_ref):
    # x_ref: (TR, D) row tile; w_ref: (D, D) resident folded weight; b_ref: (1, D).
    x_hat = _layer_norm_rows(x_ref[...].astype(jnp.float32), x_ref.shape[-1])
    y = x_hat.astype(w_ref.dtype)                       # MXU runs in input dtype
    out = jnp.dot(y, w_ref[...], preferred_element_type=jnp.float32)
    o_ref[...] = (out + b_ref[...]).astype(o_ref.dtype)


def _prenorm_coltiled_kernel(x_ref, w_ref, b_ref, o_ref, xhat_ref):
    # Column-tiled variant for weights too large to keep resident in VMEM.
    # The x block index is constant across j (DMA'd once per row tile); the
    # LayerNorm result is computed once per row tile and cached in VMEM scratch.
    @pl.when(pl.program_id(1) == 0)
    def _():
        x_hat = _layer_norm_rows(x_ref[...].astype(jnp.float32), x_ref.shape[-1])
        xhat_ref[...] = x_hat.astype(xhat_ref.dtype)

    out = jnp.dot(xhat_ref[...], w_ref[...], preferred_element_type=jnp.float32)
    o_ref[...] = (out + b_ref[...]).astype(o_ref.dtype)


def prenorm(x, ln_gamma, ln_beta, lin_w, lin_b, *, block_rows=256,
            matmul_dtype=None):
    """PreNorm(dim, fn=Linear(dim, dim)): fn(LayerNorm(x)).

    x: (..., D). ln_gamma/ln_beta: (D,). lin_w: (D, D) [out, in]. lin_b: (D,).
    """
    *lead, D = x.shape
    R = 1
    for s in lead:
        R *= int(s)
    out_dtype = x.dtype
    act_itemsize = jnp.dtype(out_dtype).itemsize
    mxu_dtype = jnp.dtype(matmul_dtype) if matmul_dtype is not None \
        else jnp.dtype(out_dtype)
    mxu_itemsize = mxu_dtype.itemsize

    # Fold LayerNorm's affine into the linear layer (O(D^2) once vs O(R*D^2)):
    #   (x_hat*g + beta) @ W^T + b == x_hat @ (g[:,None]*W^T) + (beta @ W^T + b)
    w_t32 = lin_w.T.astype(jnp.float32)
    w_folded = (ln_gamma.astype(jnp.float32)[:, None] * w_t32).astype(mxu_dtype)
    b_folded = (ln_beta.astype(jnp.float32) @ w_t32
                + lin_b.astype(jnp.float32)).reshape(1, D)

    # Row tiling: no padding / extra HBM pass. Blocks use the full hidden dim
    # (allowed when the block dim equals the array dim); the last partial row
    # block is handled by Pallas boundary masking -- rows are independent, so
    # out-of-bounds rows never contaminate valid outputs.
    x2d = x.reshape(R, D)
    TR = min(block_rows, ((R + 7) // 8) * 8)
    n_row_tiles = pl.cdiv(R, TR)

    # Per-generation VMEM capacity with ~15% headroom.
    try:
        vmem_cap = int(pltpu.get_tpu_info().vmem_capacity_bytes)
    except Exception:
        vmem_cap = 64 * 1024 * 1024          # conservative fallback (v7x size)
    vmem_usable = int(0.85 * vmem_cap)

    weight_bytes = D * D * mxu_itemsize
    weight_budget = int(0.35 * vmem_cap)     # leave room for x/out tiles + scratch
    ln_scratch_bytes = 3 * TR * D * 4        # live f32 LN intermediates

    if weight_bytes <= weight_budget:
        # ---------------- resident-weight path ----------------
        # Constant-index weight: single-buffer it once it is big enough for the
        # saved buffer to matter (tiny weights keep the default, zero-risk path).
        single_buffer_w = weight_bytes >= (1 << 20)
        if single_buffer_w:
            w_spec = pl.BlockSpec((D, D), lambda i: (0, 0),
                                  pipeline_mode=pl.Buffered(1))
            w_bufs = 1
        else:
            w_spec = pl.BlockSpec((D, D), lambda i: (0, 0))
            w_bufs = 2

        vmem_need = (2 * TR * D * act_itemsize        # x tiles (double-buffered)
                     + 2 * TR * D * act_itemsize      # out tiles
                     + w_bufs * weight_bytes          # folded weight
                     + 2 * D * 4                      # folded bias
                     + ln_scratch_bytes)
        grid_spec = pltpu.PrefetchScalarGridSpec(
            num_scalar_prefetch=0,
            grid=(n_row_tiles,),
            in_specs=[
                pl.BlockSpec((TR, D), lambda i: (i, 0)),   # x row tile
                w_spec,                                    # folded weight (resident)
                pl.BlockSpec((1, D), lambda i: (0, 0)),    # folded bias
            ],
            out_specs=pl.BlockSpec((TR, D), lambda i: (i, 0)),
        )
        kernel = _prenorm_kernel
        dim_sem = ("parallel",)
    else:
        # ---------------- column-tiled path (large D, e.g. v7x) ----------------
        TN = (weight_budget // (2 * D * mxu_itemsize)) // 128 * 128
        TN = int(max(128, min(TN, D)))
        n_col_tiles = pl.cdiv(D, TN)

        vmem_need = (2 * TR * D * act_itemsize        # x tiles
                     + TR * D * mxu_itemsize          # cached x_hat scratch
                     + 2 * D * TN * mxu_itemsize      # weight column tiles
                     + 2 * TR * TN * act_itemsize     # out tiles
                     + 2 * TN * 4                     # bias tiles
                     + ln_scratch_bytes)
        grid_spec = pltpu.PrefetchScalarGridSpec(
            num_scalar_prefetch=0,
            grid=(n_row_tiles, n_col_tiles),
            in_specs=[
                pl.BlockSpec((TR, D), lambda i, j: (i, 0)),   # x (constant in j)
                pl.BlockSpec((D, TN), lambda i, j: (0, j)),   # weight column tile
                pl.BlockSpec((1, TN), lambda i, j: (0, j)),   # bias tile
            ],
            out_specs=pl.BlockSpec((TR, TN), lambda i, j: (i, j)),
            scratch_shapes=[pltpu.VMEM((TR, D), mxu_dtype)],  # cached x_hat
        )
        kernel = _prenorm_coltiled_kernel
        # j carries the cached LayerNorm scratch -> "arbitrary"; row axis shards
        # across TensorCores on megacore parts.
        # TODO(synk): if xprof shows the 2nd v7x TensorCore idle, switch the row
        # axis to pltpu.CORE_PARALLEL (and budget the weight per-core).
        dim_sem = ("parallel", "arbitrary")

    vmem_limit = min(max(int(1.25 * vmem_need), 32 * 1024 * 1024), vmem_usable)

    cost = pl.CostEstimate(
        flops=2 * R * D * D + 8 * R * D,
        transcendentals=R,
        bytes_accessed=2 * R * D * act_itemsize + weight_bytes + 4 * D,
    )

    out2d = pl.pallas_call(
        kernel,
        out_shape=jax.ShapeDtypeStruct((R, D), out_dtype),
        grid_spec=grid_spec,
        compiler_params=pltpu.CompilerParams(
            dimension_semantics=dim_sem,
            vmem_limit_bytes=vmem_limit,
        ),
        cost_estimate=cost,
    )(x2d, w_folded, b_folded)

    return out2d.reshape(x.shape)


def prenorm_ref(x, ln_gamma, ln_beta, lin_w, lin_b):
    mean = jnp.mean(x, axis=-1, keepdims=True)
    var = jnp.mean((x - mean) ** 2, axis=-1, keepdims=True)
    y = (x - mean) / jnp.sqrt(var + LN_EPS) * ln_gamma + ln_beta
    return y @ lin_w.T + lin_b


if __name__ == "__main__":
    B, N, D = 2, 8, 32
    key = jax.random.PRNGKey(0)
    kx, kw, kb, kg, kbt = jax.random.split(key, 5)

    x = jax.random.normal(kx, (B, N, D), dtype=jnp.float32)

    # LayerNorm params (perturbed from the 1/0 default so the affine fold is
    # actually exercised by the test).
    ln_gamma = 1.0 + 0.1 * jax.random.normal(kg, (D,), dtype=jnp.float32)
    ln_beta = 0.1 * jax.random.normal(kbt, (D,), dtype=jnp.float32)

    # fn = Linear(D, D): uniform init like torch (bound = 1/sqrt(D))
    bound = 1.0 / (D ** 0.5)
    lin_w = jax.random.uniform(kw, (D, D), minval=-bound, maxval=bound,
                               dtype=jnp.float32)
    lin_b = jax.random.uniform(kb, (D,), minval=-bound, maxval=bound,
                               dtype=jnp.float32)

    out = prenorm(x, ln_gamma, ln_beta, lin_w, lin_b)
    out = jax.block_until_ready(out)

    ref = prenorm_ref(x, ln_gamma, ln_beta, lin_w, lin_b)
    assert out.shape == (B, N, D)
    err = jnp.max(jnp.abs(out - ref))
    assert jnp.allclose(out, ref, atol=1e-4, rtol=1e-4), f"max err {err}"

    print("KERNEL_OK")
</pallas_src>

<mosaic_0001>
module attributes {stable_mosaic.version = 11 : i64} {
  func.func @_prenorm_kernel(%arg0: i32, %arg1: memref<16x32xf32, #tpu.memory_space<vmem>>, %arg2: memref<32x32xf32, #tpu.memory_space<vmem>>, %arg3: memref<1x32xf32, #tpu.memory_space<vmem>>, %arg4: memref<16x32xf32, #tpu.memory_space<vmem>>) attributes {dimension_semantics = [#tpu.dimension_semantics<parallel>], iteration_bounds = array<i64: 1>, scalar_prefetch = 0 : i64, scratch_operands = 0 : i64, tpu.core_type = #tpu.core_type<tc>, window_params = [{transform_indices = @transform_0, window_bounds = array<i64: 16, 32>}, {pipeline_mode = #tpu.pipeline_mode<synchronous>, transform_indices = @transform_1, window_bounds = array<i64: 32, 32>}, {pipeline_mode = #tpu.pipeline_mode<synchronous>, transform_indices = @transform_2, window_bounds = array<i64: 1, 32>}, {transform_indices = @transform_3, window_bounds = array<i64: 16, 32>}]} {
    %c0 = arith.constant 0 : index
    %c0_0 = arith.constant 0 : index
    %0 = vector.load %arg1[%c0, %c0_0] : memref<16x32xf32, #tpu.memory_space<vmem>>, vector<16x32xf32>
    %cst = arith.constant dense<0.000000e+00> : vector<16xf32>
    %1 = vector.multi_reduction <add>, %0, %cst [1] : vector<16x32xf32> to vector<16xf32>
    %2 = vector.shape_cast %1 : vector<16xf32> to vector<16x1xf32>
    %cst_1 = arith.constant 3.125000e-02 : f32
    %3 = vector.broadcast %cst_1 : f32 to vector<16x1xf32>
    %4 = arith.mulf %2, %3 : vector<16x1xf32>
    %5 = vector.broadcast %4 : vector<16x1xf32> to vector<16x32xf32>
    %6 = arith.subf %0, %5 : vector<16x32xf32>
    %7 = arith.mulf %6, %6 : vector<16x32xf32>
    %cst_2 = arith.constant dense<0.000000e+00> : vector<16xf32>
    %8 = vector.multi_reduction <add>, %7, %cst_2 [1] : vector<16x32xf32> to vector<16xf32>
    %9 = vector.shape_cast %8 : vector<16xf32> to vector<16x1xf32>
    %cst_3 = arith.constant 3.125000e-02 : f32
    %10 = vector.broadcast %cst_3 : f32 to vector<16x1xf32>
    %11 = arith.mulf %9, %10 : vector<16x1xf32>
    %cst_4 = arith.constant 9.99999974E-6 : f32
    %12 = vector.broadcast %cst_4 : f32 to vector<16x1xf32>
    %13 = arith.addf %11, %12 : vector<16x1xf32>
    %14 = math.rsqrt %13 : vector<16x1xf32>
    %15 = vector.broadcast %14 : vector<16x1xf32> to vector<16x32xf32>
    %16 = arith.mulf %6, %15 : vector<16x32xf32>
    %c0_5 = arith.constant 0 : index
    %c0_6 = arith.constant 0 : index
    %17 = vector.load %arg2[%c0_5, %c0_6] : memref<32x32xf32, #tpu.memory_space<vmem>>, vector<32x32xf32>
    %cst_7 = arith.constant dense<0.000000e+00> : vector<16x32xf32>
    %18 = tpu.matmul %16, %17, %cst_7 {dimension_numbers = #tpu.dot_dimension_numbers<[1], [0], [0], [1], [0, 0, 1, 1], [], []>} : vector<16x32xf32>, vector<32x32xf32>, vector<16x32xf32> -> vector<16x32xf32>
    %c0_8 = arith.constant 0 : index
    %c0_9 = arith.constant 0 : index
    %19 = vector.load %arg3[%c0_8, %c0_9] : memref<1x32xf32, #tpu.memory_space<vmem>>, vector<1x32xf32>
    %20 = vector.broadcast %19 : vector<1x32xf32> to vector<16x32xf32>
    %21 = arith.addf %18, %20 : vector<16x32xf32>
    %c0_10 = arith.constant 0 : index
    %c0_11 = arith.constant 0 : index
    %22 = vector.load %arg4[%c0_10, %c0_11] : memref<16x32xf32, #tpu.memory_space<vmem>>, vector<16x32xf32>
    tpu.vector_store %arg4[%c0_10, %c0_11], %21 {strides = array<i32>} : memref<16x32xf32, #tpu.memory_space<vmem>>, vector<16x32xf32>,
    return
  }
  func.func @transform_0(%arg0: i32) -> (i32, i32) {
    %c0_i32 = arith.constant 0 : i32
    %c0_i32_0 = arith.constant 0 : i32
    return %arg0, %c0_i32 : i32, i32
  }
  func.func @transform_1(%arg0: i32) -> (i32, i32) {
    %c0_i32 = arith.constant 0 : i32
    %c0_i32_0 = arith.constant 0 : i32
    %c0_i32_1 = arith.constant 0 : i32
    return %c0_i32, %c0_i32_0 : i32, i32
  }
  func.func @transform_2(%arg0: i32) -> (i32, i32) {
    %c0_i32 = arith.constant 0 : i32
    %c0_i32_0 = arith.constant 0 : i32
    %c0_i32_1 = arith.constant 0 : i32
    return %c0_i32, %c0_i32_0 : i32, i32
  }
  func.func @transform_3(%arg0: i32) -> (i32, i32) {
    %c0_i32 = arith.constant 0 : i32
    %c0_i32_0 = arith.constant 0 : i32
    return %arg0, %c0_i32 : i32, i32
  }
}

</mosaic_0001>

<bundles_post_ra>
// kernel: tpu_custom_call.1
= control target key start
LH: loop header
LB: loop body
LE: loop exit
PB: predicated region body
PF: predicated region fallthrough
CT: control target
= control target key end

     0   :  { %8 = vsyncpa [#allocation3], 0  ;;  %s333_s0 = inlined_call_operand.hbm [shape: f32[16,32], index: 0, kind: input, shape index: {}]   ;;  %s334_s1 = inlined_call_operand.hbm [shape: f32[32,32], index: 1, kind: input, shape index: {}]   ;;  %s335_s2 = inlined_call_operand.vmem [shape: f32[1,32], index: 2, kind: input, shape index: {}]   ;;  %s336_s3 = inlined_call_operand.hbm [shape: f32[16,32], index: 3, kind: output, shape index: {}]  }
   0x1   :  { %9 = vsyncpa [#allocation6], 0 }
   0x2   :  { %10 = vsyncpa [#allocation4], 0  ;;  %s279_s12 = smov [#allocation2]  }
   0x3   :  { %s16_s13 = sshll.u32 %s279_s12, 4  ;;  %s17_s13 = int_to_ptr.vmem [resolvable:$true] %s16_s13 }
   0x4   :  { %s221_s14 = scalar_lea.vmem %s17_s13, 256  ;;  %p226_p1 = scmp.lt.s32.totalorder %s17_s13, %s17_s13 }
   0x5   :  { %p222_p0 = scmp.ne.s32.totalorder %s17_s13, %s221_s14  ;;  %p227_p2 = scmp.lt.s32.totalorder %s221_s14, %s221_s14 }
   0x7   :  { %p228_p3 = por %p227_p2, %p226_p1 }
   0x9   :  { %p229_p4 = pnand %p228_p3, %p222_p0 }
   0xb   :  { %232 = shalt.err (!%p229_p4)
}
   0xc   :  { %s280_s15 = smov 128   ;;  %s281_s16 = smov 8  }
   0xd   :  { %22 = dma.hbm_to_vmem [thread:$0]  %s333_s0, 256, %s17_s13, [#allocation3], %s280_s15, %s280_s15, %s281_s16  }
   0xe   :  { %s282_s19 = smov [#allocation5]  }
   0xf   :  { %s28_s20 = sshll.u32 %s282_s19, 4  ;;  %s29_s20 = int_to_ptr.vmem [resolvable:$true] %s28_s20 }
  0x10   :  { %s241_s21 = scalar_lea.vmem %s29_s20, 512  ;;  %p246_p6 = scmp.lt.s32.totalorder %s29_s20, %s29_s20 }
  0x11   :  { %p242_p5 = scmp.ne.s32.totalorder %s29_s20, %s241_s21  ;;  %p247_p7 = scmp.lt.s32.totalorder %s241_s21, %s241_s21 }
  0x13   :  { %p248_p8 = por %p247_p7, %p246_p6 }
  0x15   :  { %p249_p9 = pnand %p248_p8, %p242_p5 }
  0x17   :  { %252 = shalt.err (!%p249_p9)
}
  0x18   :  { %34 = dma.hbm_to_vmem [thread:$0]  %s334_s1, 512, %s29_s20, [#allocation6], %s280_s15, %s280_s15, %s281_s16  }
  0x19   :  { %273 = dma.done.wait [#allocation3], 256  }
  0x1a   :  { %274 = vsyncadd [#allocation3], 4294967040 }
  0x1b   :  { %275 = dma.done.wait [#allocation6], 512  }
  0x1c   :  { %276 = vsyncadd [#allocation6], 4294966784  ;;  %vm45_vm0 = vcmask 261120   ;;  %v43_v0 = vld [vmem:[#allocation2] sm:$0xff]  ;;  %v44_v1 = vld [vmem:[#allocation2 + $0x8] sm:$0xff]  ;;  %s283_s24 = smov [#allocation7]  }
  0x1d   :  { %v46_v2 = vsel %vm45_vm0, %v43_v0, 0.0  ;;  %v49_v3 = vsel %vm45_vm0, %v44_v1, 0.0  ;;  %v75_v14 = vld [vmem:[#allocation5 + $0x18] sm:$0xff]  ;;  %v74_v15 = vld [vmem:[#allocation5 + $0x10] sm:$0xff]  ;;  %v73_v16 = vld [vmem:[#allocation5 + $0x8] sm:$0xff]  ;;  %s171_s25 = sshll.u32 %s283_s24, 4  ;;  %s172_s25 = int_to_ptr.vmem [resolvable:$true] %s171_s25 }
  0x1e   :  { %47 = vadd.xlane.f32.xlu0 %v46_v2  ;;  %193 = vmatprep.subr.mxu0 %v75_v14  ;;  %v72_v17 = vld [vmem:[#allocation5] sm:$0xff]  ;;  %v184_v28 = vld [vmem:[%s335_s2] ss:$0 sm:$0xff]  ;;  %s253_s26 = scalar_lea.vmem %s172_s25, 256  ;;  %p258_p11 = scmp.lt.s32.totalorder %s172_s25, %s172_s25 }
  0x1f   :  { %194 = vmatpush3.msra.mxu0 %v75_v14  ;;  %p254_p10 = scmp.ne.s32.totalorder %s172_s25, %s253_s26  ;;  %p259_p12 = scmp.lt.s32.totalorder %s253_s26, %s253_s26 }
  0x20   :  { %195 = vmatprep.subr.mxu0 %v74_v15 }
  0x21   :  { %196 = vmatpush3.msra.mxu0 %v74_v15  ;;  %p260_p13 = por %p259_p12, %p258_p11 }
  0x22   :  { %50 = vadd.xlane.f32.xlu0 %v49_v3  ;;  %197 = vmatprep.subr.mxu0 %v73_v16 }
  0x23   :  { %198 = vmatpush3.msra.mxu0 %v73_v16  ;;  %p261_p0 = pnand %p260_p13, %p254_p10 }
  0x24   :  { %199 = vmatprep.subr.mxu0 %v72_v17 }
  0x25   :  { %200 = vmatpush3.msra.mxu0 %v72_v17 }
  0xa7   :  { %v48_v4 = vpop.xlane.xlu0 %47 }
  0xa8   :  { %v52_v5 = vmul.f32 0.03125, %v48_v4 }
  0xaa   :  { %v54_v6 = vsub.f32 %v43_v0, %v52_v5 }
  0xab   :  { %v51_v7 = vpop.xlane.xlu0 %50 }
  0xac   :  { %v53_v8 = vmul.f32 0.03125, %v51_v7  ;;  %v56_v9 = vmul.f32 %v54_v6, %v54_v6 }
  0xae   :  { %v55_v10 = vsub.f32 %v44_v1, %v53_v8  ;;  %v58_v11 = vsel %vm45_vm0, %v56_v9, 0.0 }
  0xaf   :  { %59 = vadd.xlane.f32.xlu1 %v58_v11 }
  0xb0   :  { %v57_v12 = vmul.f32 %v55_v10, %v55_v10 }
  0xb2   :  { %v61_v13 = vsel %vm45_vm0, %v57_v12, 0.0 }
  0xb3   :  { %62 = vadd.xlane.f32.xlu1 %v61_v13 }
 0x138   :  { %v60_v18 = vpop.xlane.xlu1 %59 }
 0x139   :  { %v64_v19 = vmul.f32 0.03125, %v60_v18 }
 0x13b   :  { %v66_v20 = vadd.f32 1e-05, %v64_v19 }
 0x13c   :  { %v63_v21 = vpop.xlane.xlu1 %62 }
 0x13d   :  { %209 = vrsqrt.f32 %v66_v20  ;;  %v65_v22 = vmul.f32 0.03125, %v63_v21 }
 0x13f   :  { %v67_v23 = vadd.f32 1e-05, %v65_v22 }
 0x141   :  { %211 = vrsqrt.f32 %v67_v23 }
 0x14a   :  { %v210_v24 = vpop.eup %209 }
 0x14b   :  { %v70_v25 = vmul.f32 %v210_v24, %v54_v6 }
 0x14d   :  { %201 = vmatprep.mubr.msk.f32.mxu0 %vm45_vm0, %v70_v25 }
 0x14e   :  { %v212_v26 = vpop.eup %211 }
 0x14f   :  { %v71_v27 = vmul.f32 %v212_v26, %v55_v10 }
 0x151   :  { %202 = vmatmul.mubr.msk.f32.vlgmr.msra.gmra.mxu0 %vm45_vm0, %v71_v27 }
 0x211   :  { %v203_v29 = vpop.f32.mrf.mxu0 }
 0x212   :  { %v161_v30 = vadd.f32 %v203_v29, %v184_v28 }
 0x213   :  { %v155_v31 = vpop.f32.mrf.mxu0 }
 0x214   :  { %165 = vst.msk [vmem:[#allocation7 + $0x8] sm:$0xff] %vm45_vm0, %v161_v30  ;;  %v156_v32 = vadd.f32 %v184_v28, %v155_v31 }
 0x216   :  { %164 = vst.msk [vmem:[#allocation7] sm:$0xff] %vm45_vm0, %v156_v32 }
 0x217   :  { %264 = shalt.err (!%p261_p0)
}
 0x218   :  { %177 = dma.vmem_to_hbm [thread:$0]  %s172_s25, 256, %s336_s3, [#allocation4], %s280_s15, %s280_s15, %s281_s16  }
 0x219   :  { %277 = dma.done.wait [#allocation4], 256  }
 0x21a   :  { %278 = vsyncadd [#allocation4], 4294967040 }
 0x21b   :  { %181 = vsyncpa [#allocation3], 1 }
 0x21c   :  { %182 = vsyncpa [#allocation6], 1 }
 0x21d   :  { %183 = vsyncpa [#allocation4], 1 }

</bundles_post_ra>
